<compile_context>
chip_gen: v7x
topology: tpu7x:2x2x1
jax: 0.10.0
libtpu: 0.0.40
codegen_flags: <defaults>
</compile_context>

<pallas_src>
import jax
import jax.numpy as jnp
from jax import lax
from jax.experimental import pallas as pl
from jax.experimental.pallas import tpu as pltpu

# TODO(synk): torch.distributed scatter / all-reduce / reduce-scatter
# collectives are identities at world_size=1; a multi-chip reduction would use
# pltpu.make_async_remote_copy + pltpu.get_barrier_semaphore.


def _round_up(x: int, m: int) -> int:
    return ((x + m - 1) // m) * m


def _pick_tile(dim: int, target: int, align: int) -> int:
    """Largest tile <= target (multiple of `align`) dividing the aligned dim.

    Prefers exact divisors so no jnp.pad copy is needed for the common
    128-aligned transformer dims; falls back to `target` (+ padding) if only
    tiny exact divisors exist.
    """
    dim_a = _round_up(dim, align)
    if dim_a <= target:
        return dim_a
    t = max(align, (target // align) * align)
    best = align
    for cand in range(t, align - 1, -align):
        if dim_a % cand == 0:
            best = cand
            break
    if best * 2 < t:  # exact divisor degenerately small -> prefer padding
        return t
    return best


def _tpu_generation() -> str:
    try:
        kind = jax.devices()[0].device_kind.lower()
    except Exception:
        return "unknown"
    if "v7" in kind or "7x" in kind:
        return "v7x"
    if "v6" in kind:
        return "v6e"
    if "v5" in kind:
        return "v5e"
    return "unknown"


# Tile targets + scoped-VMEM limit per generation. Per-step arithmetic
# intensity ~ tm*tn/(tm+tn) elements of output per element streamed; these
# targets put the kernel at / near the MXU-bound crossover per generation.
_TILE_CONFIG = {
    "v5e": dict(tm=512, tn=512, tk=1024, vmem=64 * 1024 * 1024),
    "v6e": dict(tm=1024, tn=1024, tk=1024, vmem=64 * 1024 * 1024),
    "v7x": dict(tm=768, tn=768, tk=1024, vmem=32 * 1024 * 1024),
    "unknown": dict(tm=512, tn=512, tk=1024, vmem=48 * 1024 * 1024),
}


def _rpl_kernel_bias(x_ref, w_ref, b_ref, o_ref, acc_ref):
    # x_ref  : (tm, tk) activation tile
    # w_ref  : (tn, tk) weight tile, stored (output, input) layout
    # b_ref  : (1,  tn) bias tile
    # o_ref  : (tm, tn) output tile
    # acc_ref: (tm, tn) f32 accumulator, resident across the K grid axis
    k = pl.program_id(2)

    @pl.when(k == 0)
    def _():
        # Fold the bias into the accumulator init: saves a full (tm, tn) VPU
        # add + bias read in the finalize epilogue (critical writeback path).
        acc_ref[...] = jnp.broadcast_to(
            b_ref[...].astype(jnp.float32), acc_ref.shape
        )

    # Contract on the last dim of both operands (transposed-RHS MXU matmul,
    # same form as q @ k.T) so the weight is used in its stored (N, K) layout.
    acc_ref[...] += lax.dot_general(
        x_ref[...],
        w_ref[...],
        dimension_numbers=(((1,), (1,)), ((), ())),
        preferred_element_type=jnp.float32,
    )

    @pl.when(k == pl.num_programs(2) - 1)
    def _():
        o_ref[...] = acc_ref[...].astype(o_ref.dtype)


def _rpl_kernel_nobias(x_ref, w_ref, o_ref, acc_ref):
    k = pl.program_id(2)

    @pl.when(k == 0)
    def _():
        acc_ref[...] = jnp.zeros_like(acc_ref)

    acc_ref[...] += lax.dot_general(
        x_ref[...],
        w_ref[...],
        dimension_numbers=(((1,), (1,)), ((), ())),
        preferred_element_type=jnp.float32,
    )

    @pl.when(k == pl.num_programs(2) - 1)
    def _():
        o_ref[...] = acc_ref[...].astype(o_ref.dtype)


def row_parallel_linear(x, weight, bias=None, *, tm=None, tn=None, tk=None,
                        vmem_limit_bytes=None):
    """output = x @ weight.T (+ bias).

    x:      (..., input_size)
    weight: (output_size, input_size)  -- stored layout, as in the PyTorch module
    bias:   (output_size,) or None
    """
    *lead, K = x.shape
    N, Kw = weight.shape
    assert K == Kw, f"feature dim mismatch: {K} vs {Kw}"

    x2d = x.reshape(-1, K)
    M = x2d.shape[0]
    has_bias = bias is not None

    gen = _tpu_generation()
    cfg = _TILE_CONFIG[gen]
    tm = cfg["tm"] if tm is None else tm
    tn = cfg["tn"] if tn is None else tn
    tk = cfg["tk"] if tk is None else tk
    vmem_limit = cfg["vmem"] if vmem_limit_bytes is None else vmem_limit_bytes

    in_itemsize = jnp.dtype(x.dtype).itemsize
    out_itemsize = in_itemsize
    # Sublane packing per dtype (f32:8, bf16:16, 8-bit:32). Note: v7x's MXU
    # has no int8 path -- an 8-bit quantized variant must use fp8 there.
    m_align = {4: 8, 2: 16, 1: 32}.get(in_itemsize, 8)

    tm = _pick_tile(M, tm, m_align)
    tn = _pick_tile(N, tn, 128)
    tk = _pick_tile(K, tk, 128)

    # Safety: shrink tk (then tn/tm) if a custom config would overflow the
    # scoped-VMEM budget (double-buffered x / w / out tiles + f32 acc + bias).
    def _vmem_bytes(tm_, tn_, tk_):
        return (2 * tm_ * tk_ * in_itemsize + 2 * tn_ * tk_ * in_itemsize
                + 2 * tm_ * tn_ * out_itemsize + tm_ * tn_ * 4
                + (2 * tn_ * in_itemsize if has_bias else 0))

    while _vmem_bytes(tm, tn, tk) > int(0.8 * vmem_limit):
        if tk > 512:
            tk = max(512, tk // 2)
        elif tn >= tm and tn > 256:
            tn = max(256, _round_up(tn // 2, 128))
        elif tm > 256:
            tm = max(256, _round_up(tm // 2, m_align))
        else:
            break

    # v7x has two TensorCores; a 1x1 "parallel" grid idles one of them. For
    # skinny-M (decode-like) shapes, split N into at least two blocks.
    if gen == "v7x" and N > 128:
        if _round_up(M, tm) // tm == 1 and _round_up(N, tn) // tn == 1:
            tn_split = _round_up(-(-N // 2), 128)
            if _round_up(N, tn_split) // tn_split >= 2:
                tn = tn_split

    Mp, Np, Kp = _round_up(M, tm), _round_up(N, tn), _round_up(K, tk)

    # Zero-padding only when tiles don't divide (rare after _pick_tile):
    # padded K columns contribute 0 to the dot product; padded M rows / N
    # columns are sliced off below.
    x_p = x2d if (Mp, Kp) == (M, K) else jnp.pad(x2d, ((0, Mp - M), (0, Kp - K)))
    w_p = weight if (Np, Kp) == (N, K) else jnp.pad(
        weight, ((0, Np - N), (0, Kp - K)))

    grid = (Mp // tm, Np // tn, Kp // tk)
    gm, gn, gk = grid

    # Advisory cost: report real HBM traffic including re-reads so XLA can
    # overlap neighbouring ops with this (potentially DMA-bound) kernel.
    cost = pl.CostEstimate(
        flops=2 * Mp * Np * Kp,
        transcendentals=0,
        bytes_accessed=(Mp * Kp * gn * in_itemsize       # activations, re-read per N block
                        + Np * Kp * gm * in_itemsize     # weight, re-read per M block
                        + Mp * Np * out_itemsize
                        + (Np * in_itemsize if has_bias else 0)),
    )

    in_specs = [
        pl.BlockSpec((tm, tk), lambda i, j, k: (i, k)),   # activations (M, K)
        pl.BlockSpec((tn, tk), lambda i, j, k: (j, k)),   # weight, stored (N, K)
        # If a profile shows exposed weight DMA, add pipeline_mode=pl.Buffered(3)
        # to the weight spec (there is spare VMEM at these tile sizes).
    ]
    args = [x_p, w_p]
    if has_bias:
        b_p = bias.reshape(1, N)
        if Np != N:
            b_p = jnp.pad(b_p, ((0, 0), (0, Np - N)))
        in_specs.append(pl.BlockSpec((1, tn), lambda i, j, k: (0, j)))
        args.append(b_p)
        kernel = _rpl_kernel_bias
    else:
        kernel = _rpl_kernel_nobias

    out_p = pl.pallas_call(
        kernel,
        out_shape=jax.ShapeDtypeStruct((Mp, Np), x.dtype),
        grid_spec=pltpu.PrefetchScalarGridSpec(
            num_scalar_prefetch=0,
            grid=grid,
            in_specs=in_specs,
            out_specs=pl.BlockSpec((tm, tn), lambda i, j, k: (i, j)),
            scratch_shapes=[pltpu.VMEM((tm, tn), jnp.float32)],
        ),
        compiler_params=pltpu.CompilerParams(
            dimension_semantics=("parallel", "parallel", "arbitrary"),
            vmem_limit_bytes=vmem_limit,
        ),
        cost_estimate=cost,
    )(*args)

    out2d = out_p[:M, :N]
    return out2d.reshape(*lead, N)


if __name__ == "__main__":
    # Small shapes consistent with the module: batch=2, seq=8, hidden=32.
    input_size = 32
    output_size = 32
    batch, seq = 2, 8

    key = jax.random.PRNGKey(0)
    kx, kw = jax.random.split(key)

    x = jax.random.normal(kx, (batch, seq, input_size), dtype=jnp.float32)
    # Parameter init mirrors __init__: weight ~ randn(output, input/world_size),
    # bias = zeros(output). world_size = 1 here.
    weight = jax.random.normal(kw, (output_size, input_size), dtype=jnp.float32)
    bias = jnp.zeros((output_size,), dtype=jnp.float32)

    out = jax.block_until_ready(row_parallel_linear(x, weight, bias))
    ref = x @ weight.T + bias
    assert out.shape == (batch, seq, output_size)
    assert jnp.allclose(out, ref, atol=1e-5, rtol=1e-5)

    # Also exercise the bias=None variant (no zero-bias DMA / epilogue add).
    out_nb = jax.block_until_ready(row_parallel_linear(x, weight, None))
    assert jnp.allclose(out_nb, x @ weight.T, atol=1e-5, rtol=1e-5)

    print("KERNEL_OK")
</pallas_src>

<mosaic_0001>
module attributes {stable_mosaic.version = 11 : i64} {
  func.func @_rpl_kernel_bias(%arg0: i32, %arg1: i32, %arg2: i32, %arg3: memref<16x128xf32, #tpu.memory_space<vmem>>, %arg4: memref<128x128xf32, #tpu.memory_space<vmem>>, %arg5: memref<1x128xf32, #tpu.memory_space<vmem>>, %arg6: memref<16x128xf32, #tpu.memory_space<vmem>>, %arg7: memref<16x128xf32, #tpu.memory_space<vmem>>) attributes {dimension_semantics = [#tpu.dimension_semantics<parallel>, #tpu.dimension_semantics<parallel>, #tpu.dimension_semantics<arbitrary>], iteration_bounds = array<i64: 1, 1, 1>, scalar_prefetch = 0 : i64, scratch_operands = 1 : i64, tpu.core_type = #tpu.core_type<tc>, window_params = [{transform_indices = @transform_0, window_bounds = array<i64: 16, 128>}, {transform_indices = @transform_1, window_bounds = array<i64: 128, 128>}, {transform_indices = @transform_2, window_bounds = array<i64: 1, 128>}, {transform_indices = @transform_3, window_bounds = array<i64: 16, 128>}]} {
    %c0_i32 = arith.constant 0 : i32
    %0 = arith.cmpi eq, %arg2, %c0_i32 : i32
    %1 = arith.extui %0 : i1 to i32
    %c0_i32_0 = arith.constant 0 : i32
    %2 = arith.cmpi ne, %1, %c0_i32_0 : i32
    scf.if %2 {
      %c0_10 = arith.constant 0 : index
      %c0_11 = arith.constant 0 : index
      %12 = vector.load %arg5[%c0_10, %c0_11] : memref<1x128xf32, #tpu.memory_space<vmem>>, vector<1x128xf32>
      %13 = vector.shape_cast %12 : vector<1x128xf32> to vector<1x128xf32>
      %14 = vector.broadcast %13 : vector<1x128xf32> to vector<16x128xf32>
      %c0_12 = arith.constant 0 : index
      %c0_13 = arith.constant 0 : index
      %15 = vector.load %arg7[%c0_12, %c0_13] : memref<16x128xf32, #tpu.memory_space<vmem>>, vector<16x128xf32>
      tpu.vector_store %arg7[%c0_12, %c0_13], %14 {strides = array<i32>} : memref<16x128xf32, #tpu.memory_space<vmem>>, vector<16x128xf32>,
    } else {
    }
    %c0 = arith.constant 0 : index
    %c0_1 = arith.constant 0 : index
    %3 = vector.load %arg7[%c0, %c0_1] : memref<16x128xf32, #tpu.memory_space<vmem>>, vector<16x128xf32>
    %c0_2 = arith.constant 0 : index
    %c0_3 = arith.constant 0 : index
    %4 = vector.load %arg3[%c0_2, %c0_3] : memref<16x128xf32, #tpu.memory_space<vmem>>, vector<16x128xf32>
    %c0_4 = arith.constant 0 : index
    %c0_5 = arith.constant 0 : index
    %5 = vector.load %arg4[%c0_4, %c0_5] : memref<128x128xf32, #tpu.memory_space<vmem>>, vector<128x128xf32>
    %cst = arith.constant dense<0.000000e+00> : vector<16x128xf32>
    %6 = tpu.matmul %4, %5, %cst {dimension_numbers = #tpu.dot_dimension_numbers<[1], [1], [0], [0], [0, 0, 1, 0], [], []>} : vector<16x128xf32>, vector<128x128xf32>, vector<16x128xf32> -> vector<16x128xf32>
    %7 = arith.addf %3, %6 : vector<16x128xf32>
    %c0_6 = arith.constant 0 : index
    %c0_7 = arith.constant 0 : index
    %8 = vector.load %arg7[%c0_6, %c0_7] : memref<16x128xf32, #tpu.memory_space<vmem>>, vector<16x128xf32>
    tpu.vector_store %arg7[%c0_6, %c0_7], %7 {strides = array<i32>} : memref<16x128xf32, #tpu.memory_space<vmem>>, vector<16x128xf32>,
    %c0_i32_8 = arith.constant 0 : i32
    %9 = arith.cmpi eq, %arg2, %c0_i32_8 : i32
    %10 = arith.extui %9 : i1 to i32
    %c0_i32_9 = arith.constant 0 : i32
    %11 = arith.cmpi ne, %10, %c0_i32_9 : i32
    scf.if %11 {
      %c0_10 = arith.constant 0 : index
      %c0_11 = arith.constant 0 : index
      %12 = vector.load %arg7[%c0_10, %c0_11] : memref<16x128xf32, #tpu.memory_space<vmem>>, vector<16x128xf32>
      %c0_12 = arith.constant 0 : index
      %c0_13 = arith.constant 0 : index
      %13 = vector.load %arg6[%c0_12, %c0_13] : memref<16x128xf32, #tpu.memory_space<vmem>>, vector<16x128xf32>
      tpu.vector_store %arg6[%c0_12, %c0_13], %12 {strides = array<i32>} : memref<16x128xf32, #tpu.memory_space<vmem>>, vector<16x128xf32>,
    } else {
    }
    return
  }
  func.func @transform_0(%arg0: i32, %arg1: i32, %arg2: i32) -> (i32, i32) {
    %c0_i32 = arith.constant 0 : i32
    return %arg0, %arg2 : i32, i32
  }
  func.func @transform_1(%arg0: i32, %arg1: i32, %arg2: i32) -> (i32, i32) {
    %c0_i32 = arith.constant 0 : i32
    return %arg1, %arg2 : i32, i32
  }
  func.func @transform_2(%arg0: i32, %arg1: i32, %arg2: i32) -> (i32, i32) {
    %c0_i32 = arith.constant 0 : i32
    %c0_i32_0 = arith.constant 0 : i32
    return %c0_i32, %arg1 : i32, i32
  }
  func.func @transform_3(%arg0: i32, %arg1: i32, %arg2: i32) -> (i32, i32) {
    %c0_i32 = arith.constant 0 : i32
    return %arg0, %arg1 : i32, i32
  }
}

</mosaic_0001>

<bundles_post_ra>
// kernel: tpu_custom_call.1
= control target key start
LH: loop header
LB: loop body
LE: loop exit
PB: predicated region body
PF: predicated region fallthrough
CT: control target
= control target key end

     0   :  { %8 = vsyncpa [#allocation4], 0  ;;  %s416_s0 = inlined_call_operand.hbm [shape: f32[16,128], index: 0, kind: input, shape index: {}]   ;;  %s417_s1 = inlined_call_operand.hbm [shape: f32[128,128], index: 1, kind: input, shape index: {}]   ;;  %s418_s2 = inlined_call_operand.vmem [shape: f32[1,128], index: 2, kind: input, shape index: {}]   ;;  %s419_s3 = inlined_call_operand.hbm [shape: f32[16,128], index: 3, kind: output, shape index: {}]  }
   0x1   :  { %9 = vsyncpa [#allocation7], 0 }
   0x2   :  { %10 = vsyncpa [#allocation5], 0  ;;  %s343_s12 = smov [#allocation3]   ;;  %s271_s16 = scalar_lea.hbm %s416_s0, 256 }
   0x3   :  { %s16_s13 = sshll.u32 %s343_s12, 4  ;;  %p272_p0 = scmp.ne.s32.totalorder %s416_s0, %s271_s16  ;;  %s17_s13 = int_to_ptr.vmem [resolvable:$true] %s16_s13 }
   0x4   :  { %p275_p1 = scmp.lt.u32.totalorder %s271_s16, %s416_s0 }
   0x6   :  { %p277_p2 = pnand %p275_p1, %p272_p0 }
   0x8   :  { %280 = shalt.err (!%p277_p2)
}
   0x9   :  { %s281_s21 = scalar_lea.vmem %s17_s13, 256  ;;  %p286_p4 = scmp.lt.s32.totalorder %s17_s13, %s17_s13 }
   0xa   :  { %p282_p3 = scmp.ne.s32.totalorder %s17_s13, %s281_s21  ;;  %p287_p5 = scmp.lt.s32.totalorder %s281_s21, %s281_s21 }
   0xc   :  { %p288_p6 = por %p287_p5, %p286_p4 }
   0xe   :  { %p289_p7 = pnand %p288_p6, %p282_p3 }
  0x10   :  { %292 = shalt.err (!%p289_p7)
}
  0x11   :  { %s344_s22 = smov 128   ;;  %s345_s23 = smov 8  }
  0x12   :  { %22 = dma.hbm_to_vmem [thread:$0]  %s416_s0, 256, %s17_s13, [#allocation4], %s344_s22, %s344_s22, %s345_s23  }
  0x13   :  { %s346_s26 = smov [#allocation6]   ;;  %s293_s30 = scalar_lea.hbm %s417_s1, 2048 }
  0x14   :  { %s28_s27 = sshll.u32 %s346_s26, 4  ;;  %p294_p8 = scmp.ne.s32.totalorder %s417_s1, %s293_s30  ;;  %s29_s27 = int_to_ptr.vmem [resolvable:$true] %s28_s27 }
  0x15   :  { %p297_p9 = scmp.lt.u32.totalorder %s293_s30, %s417_s1 }
  0x17   :  { %p299_p10 = pnand %p297_p9, %p294_p8 }
  0x19   :  { %302 = shalt.err (!%p299_p10)
}
  0x1a   :  { %s303_s8 = scalar_lea.vmem %s29_s27, 2048  ;;  %p308_p12 = scmp.lt.s32.totalorder %s29_s27, %s29_s27 }
  0x1b   :  { %p304_p11 = scmp.ne.s32.totalorder %s29_s27, %s303_s8  ;;  %p309_p13 = scmp.lt.s32.totalorder %s303_s8, %s303_s8 }
  0x1d   :  { %p310_p0 = por %p309_p13, %p308_p12 }
  0x1f   :  { %p311_p1 = pnand %p310_p0, %p304_p11 }
  0x21   :  { %314 = shalt.err (!%p311_p1)
}
  0x22   :  { %34 = dma.hbm_to_vmem [thread:$0]  %s417_s1, 2048, %s29_s27, [#allocation7], %s344_s22, %s344_s22, %s345_s23  }
  0x23   :  { %337 = dma.done.wait [#allocation4], 256  }
  0x24   :  { %338 = vsyncadd [#allocation4], 4294967040 }
  0x25   :  { %339 = dma.done.wait [#allocation7], 2048  }
  0x26   :  { %340 = vsyncadd [#allocation7], 4294965248  ;;  %v60_v0 = vld [vmem:[#allocation6] sm:$0xff]  ;;  %v61_v1 = vld [vmem:[#allocation6 + $0x8] sm:$0xff]  ;;  %s347_s11 = smov [#allocation8]  }
  0x27   :  { %v62_v2 = vld [vmem:[#allocation6 + $0x10] sm:$0xff]  ;;  %v234_v3 = vpack.c.bf16 %v61_v1, %v60_v0  ;;  %v63_v4 = vld [vmem:[#allocation6 + $0x18] sm:$0xff]  ;;  %v64_v7 = vld [vmem:[#allocation6 + $0x20] sm:$0xff]  ;;  %s167_s12 = sshll.u32 %s347_s11, 4  ;;  %s168_s12 = int_to_ptr.vmem [resolvable:$true] %s167_s12 }
  0x28   :  { %v238_v5 = vpack.c.bf16 %v63_v4, %v62_v2  ;;  %v58_v6 = vld [vmem:[#allocation3] sm:$0xff]  ;;  %v65_v8 = vld [vmem:[#allocation6 + $0x28] sm:$0xff]  ;;  %v67_v11 = vld [vmem:[#allocation6 + $0x38] sm:$0xff]  ;;  %s315_s13 = scalar_lea.vmem %s168_s12, 256  ;;  %p320_p3 = scmp.lt.s32.totalorder %s168_s12, %s168_s12 }
  0x29   :  { %235 = vmatprep.subr.bf16.mxu0 %v234_v3  ;;  %231 = vmatprep.mubr.f32.mxu0 %v58_v6  ;;  %v242_v9 = vpack.c.bf16 %v65_v8, %v64_v7  ;;  %v66_v10 = vld [vmem:[#allocation6 + $0x30] sm:$0xff]  ;;  %v68_v13 = vld [vmem:[#allocation6 + $0x40] sm:$0xff]  ;;  %v69_v14 = vld [vmem:[#allocation6 + $0x48] sm:$0xff]  ;;  %p316_p2 = scmp.ne.s32.totalorder %s168_s12, %s315_s13  ;;  %p321_p4 = scmp.lt.s32.totalorder %s315_s13, %s315_s13 }
  0x2a   :  { %237 = vmatpush3.bf16.xpose.msra.mxu0 %v234_v3  ;;  %v246_v12 = vpack.c.bf16 %v67_v11, %v66_v10  ;;  %v250_v15 = vpack.c.bf16 %v69_v14, %v68_v13  ;;  %v70_v16 = vld [vmem:[#allocation6 + $0x50] sm:$0xff]  ;;  %v71_v17 = vld [vmem:[#allocation6 + $0x58] sm:$0xff]  ;;  %v72_v19 = vld [vmem:[#allocation6 + $0x60] sm:$0xff] }
  0x2b   :  { %239 = vmatprep.subr.bf16.mxu0 %v238_v5  ;;  %v254_v18 = vpack.c.bf16 %v71_v17, %v70_v16  ;;  %v73_v20 = vld [vmem:[#allocation6 + $0x68] sm:$0xff]  ;;  %v74_v22 = vld [vmem:[#allocation6 + $0x70] sm:$0xff]  ;;  %v75_v23 = vld [vmem:[#allocation6 + $0x78] sm:$0xff]  ;;  %p322_p5 = por %p321_p4, %p320_p3 }
  0x2c   :  { %v258_v21 = vpack.c.bf16 %v73_v20, %v72_v19  ;;  %v262_v24 = vpack.c.bf16 %v75_v23, %v74_v22  ;;  %v59_v25 = vld [vmem:[#allocation3 + $0x8] sm:$0xff]  ;;  %v180_v26 = vld [vmem:[%s418_s2] ss:$0 sm:$0xff] }
  0x2d   :  { %p323_p6 = pnand %p322_p5, %p316_p2 }
  0x32   :  { %241 = vmatpush3.bf16.xpose.msra.mxu0 %v238_v5 }
  0x33   :  { %243 = vmatprep.subr.bf16.mxu0 %v242_v9 }
  0x3a   :  { %245 = vmatpush3.bf16.xpose.msra.mxu0 %v242_v9 }
  0x3b   :  { %247 = vmatprep.subr.bf16.mxu0 %v246_v12 }
  0x42   :  { %249 = vmatpush3.bf16.xpose.msra.mxu0 %v246_v12 }
  0x43   :  { %251 = vmatprep.subr.bf16.mxu0 %v250_v15 }
  0x4a   :  { %253 = vmatpush3.bf16.xpose.msra.mxu0 %v250_v15 }
  0x4b   :  { %255 = vmatprep.subr.bf16.mxu0 %v254_v18 }
  0x52   :  { %257 = vmatpush3.bf16.xpose.msra.mxu0 %v254_v18 }
  0x53   :  { %259 = vmatprep.subr.bf16.mxu0 %v258_v21 }
  0x5a   :  { %261 = vmatpush3.bf16.xpose.msra.mxu0 %v258_v21 }
  0x5b   :  { %263 = vmatprep.subr.bf16.mxu0 %v262_v24 }
  0x62   :  { %265 = vmatpush3.bf16.xpose.msra.mxu0 %v262_v24 }
  0x69   :  { %232 = vmatmul.mubr.f32.vlgmr.msra.gmra.mrb[0].mxu0 %v59_v25 }
 0x13c   :  { %v233_v27 = vpop.f32.mrb[0].mxu0 }
 0x13d   :  { %v152_v28 = vadd.f32 %v233_v27, %v180_v26  ;;  %v142_v29 = vpop.f32.mrb[1].mxu0 }
 0x13e   :  { %v151_v30 = vadd.f32 %v180_v26, %v142_v29 }
 0x13f   :  { %161 = vst [vmem:[#allocation8 + $0x8] sm:$0xff] %v152_v28 }
 0x140   :  { %160 = vst [vmem:[#allocation8] sm:$0xff] %v151_v30 }
 0x141   :  { %326 = shalt.err (!%p323_p6)
}
 0x142   :  { %s327_s2 = scalar_lea.hbm %s419_s3, 256 }
 0x143   :  { %p328_p7 = scmp.ne.s32.totalorder %s419_s3, %s327_s2  ;;  %p331_p8 = scmp.lt.u32.totalorder %s327_s2, %s419_s3 }
 0x145   :  { %p333_p9 = pnand %p331_p8, %p328_p7 }
 0x147   :  { %336 = shalt.err (!%p333_p9)
}
 0x148   :  { %173 = dma.vmem_to_hbm [thread:$0]  %s168_s12, 256, %s419_s3, [#allocation5], %s344_s22, %s344_s22, %s345_s23  }
 0x149   :  { %341 = dma.done.wait [#allocation5], 256  }
 0x14a   :  { %342 = vsyncadd [#allocation5], 4294967040 }
 0x14b   :  { %177 = vsyncpa [#allocation4], 1 }
 0x14c   :  { %178 = vsyncpa [#allocation7], 1 }
 0x14d   :  { %179 = vsyncpa [#allocation5], 1 }

</bundles_post_ra>
